<compile_context>
chip_gen: v7x
topology: tpu7x:2x2x1
jax: 0.10.0
libtpu: 0.0.40
codegen_flags: <defaults>
</compile_context>

<pallas_src>
import functools

import jax
import jax.numpy as jnp
from jax import lax
from jax.experimental import pallas as pl
from jax.experimental.pallas import tpu as pltpu


# ----------------------------- Pallas kernel ---------------------------------

def _bilstm_layer_kernel(gi_f_ref, gi_b_ref, whh_ref,
                         out_f_ref, out_b_ref, hn_ref, cn_ref,
                         h_scr, c_scr, *, seq_len, chunk, needs_mask, unroll):
    """One time-chunk of a fused fwd+bwd bidirectional LSTM layer.

    gi_f_ref : (Tc, B, 4H) bf16  precomputed input gates, forward chunk i.
    gi_b_ref : (Tc, B, 4H) bf16  precomputed input gates, backward chunk n-1-i.
    whh_ref  : (2, H, 4H) bf16   stacked recurrent weights (fwd, bwd).
    out_f_ref: (Tc, B, H) f32    forward hidden states for this chunk.
    out_b_ref: (Tc, B, H) f32    backward hidden states for chunk n-1-i.
    hn_ref   : (2, B, H)  f32    final hidden state (fwd, bwd).
    cn_ref   : (2, B, H)  f32    final cell state  (fwd, bwd).
    h_scr/c_scr: (2, B, H) f32   state carried across grid iterations.
    """
    Tc, B, G = gi_f_ref.shape
    H = G // 4

    ci = pl.program_id(0)
    n_chunks = pl.num_programs(0)

    @pl.when(ci == 0)
    def _():
        h_scr[...] = jnp.zeros_like(h_scr)
        c_scr[...] = jnp.zeros_like(c_scr)

    whh = whh_ref[...]                       # (2, H, 4H) bf16, loaded once/chunk
    t0_f = ci * chunk                        # global time of fwd step t=0
    t0_b = (n_chunks - 1 - ci) * chunk       # global time base of bwd chunk

    def step(t, carry):
        h, c = carry                                           # (2, B, H) f32
        # One batched recurrent matmul for both directions (bf16 MXU, f32 acc).
        gates_r = lax.dot_general(
            h.astype(whh.dtype), whh,
            dimension_numbers=(((2,), (1,)), ((0,), (0,))),
            preferred_element_type=jnp.float32)                # (2, B, 4H)
        tb = chunk - 1 - t                                     # chunk-local reversed idx
        gi_t = jnp.stack([gi_f_ref[t], gi_b_ref[tb]])          # (2, B, 4H) bf16
        gates = gi_t.astype(jnp.float32) + gates_r
        # Gate order (i, f, g, o) -- PyTorch LSTM convention; f32 VPU/EUP math.
        ig = jax.nn.sigmoid(gates[:, :, 0 * H:1 * H])
        fg = jax.nn.sigmoid(gates[:, :, 1 * H:2 * H])
        gg = jnp.tanh(gates[:, :, 2 * H:3 * H])
        og = jax.nn.sigmoid(gates[:, :, 3 * H:4 * H])
        c_new = fg * c + ig * gg
        h_new = og * jnp.tanh(c_new)

        # Lane-dense, per-direction stores (no shared 2H tile).
        out_f_ref[t] = h_new[0]
        out_b_ref[tb] = h_new[1]

        if needs_mask:
            # Only traced when T was padded to a multiple of Tc: padded steps
            # must not advance the carries (padded outputs are sliced away).
            keep_f = (t0_f + t < seq_len).astype(jnp.float32)
            keep_b = (t0_b + tb < seq_len).astype(jnp.float32)
            h_new = jnp.stack([keep_f * h_new[0] + (1.0 - keep_f) * h[0],
                               keep_b * h_new[1] + (1.0 - keep_b) * h[1]])
            c_new = jnp.stack([keep_f * c_new[0] + (1.0 - keep_f) * c[0],
                               keep_b * c_new[1] + (1.0 - keep_b) * c[1]])
        return h_new, c_new

    h_fin, c_fin = lax.fori_loop(0, chunk, step, (h_scr[...], c_scr[...]),
                                 unroll=unroll)
    h_scr[...] = h_fin
    c_scr[...] = c_fin
    # Both directions finish on the last grid step (fwd at time T-1, bwd at
    # time 0); constant out_spec keeps hn/cn resident, final write wins.
    hn_ref[...] = h_fin
    cn_ref[...] = c_fin


# ----------------------------- Layer wrapper ----------------------------------

def _input_gates(x_parts, wih_t, b):
    """Hoisted input projection: sum_k x_k @ W_ih^T[rows_k] + b (one GEMM each,
    bf16 operands, f32 accumulation). Folds the feature concat into the GEMM."""
    offs = 0
    gi = None
    for xp in x_parts:
        d = xp.shape[-1]
        w = wih_t[offs:offs + d]                               # (d, 4H), static slice
        term = jnp.einsum("tbd,dg->tbg",
                          xp.astype(jnp.bfloat16), w.astype(jnp.bfloat16),
                          preferred_element_type=jnp.float32)
        gi = term if gi is None else gi + term
        offs += d
    return gi + b                                              # (T, B, 4H) f32


def bilstm_layer(x_parts, wih_t_f, whh_t_f, b_f, wih_t_b, whh_t_b, b_b,
                 time_chunk=128):
    """One bidirectional LSTM layer on time-major inputs.

    x_parts: tuple of (T, B, d_k) tensors whose feature dims concatenate to the
             layer input. Returns (out_f (T,B,H), out_b (T,B,H), hn (2,B,H),
             cn (2,B,H))."""
    T, B = x_parts[0].shape[0], x_parts[0].shape[1]
    H = whh_t_f.shape[0]
    G = 4 * H

    Tc = max(1, min(time_chunk, T))
    n_chunks = pl.cdiv(T, Tc)
    T_pad = n_chunks * Tc
    needs_mask = (T_pad != T)
    unroll = min(4, Tc)

    # Hoisted input projection (one big GEMM per direction), then cast gi to
    # bf16 so each chunk's DMA/VMEM footprint is halved.
    gi_f = _input_gates(x_parts, wih_t_f, b_f).astype(jnp.bfloat16)
    gi_b = _input_gates(x_parts, wih_t_b, b_b).astype(jnp.bfloat16)
    if needs_mask:
        pad = ((0, T_pad - T), (0, 0), (0, 0))
        gi_f = jnp.pad(gi_f, pad)
        gi_b = jnp.pad(gi_b, pad)

    whh = jnp.stack([whh_t_f, whh_t_b]).astype(jnp.bfloat16)   # (2, H, 4H)

    kernel = functools.partial(_bilstm_layer_kernel, seq_len=T, chunk=Tc,
                               needs_mask=needs_mask, unroll=unroll)

    out_f, out_b, hn, cn = pl.pallas_call(
        kernel,
        grid_spec=pltpu.PrefetchScalarGridSpec(
            num_scalar_prefetch=0,
            grid=(n_chunks,),
            in_specs=[
                pl.BlockSpec((Tc, B, G), lambda i: (i, 0, 0)),               # gi fwd
                pl.BlockSpec((Tc, B, G), lambda i: (n_chunks - 1 - i, 0, 0)),  # gi bwd (reversed chunks)
                pl.BlockSpec((2, H, G), lambda i: (0, 0, 0)),                # W_hh^T stacked
            ],
            out_specs=[
                pl.BlockSpec((Tc, B, H), lambda i: (i, 0, 0)),               # out fwd
                pl.BlockSpec((Tc, B, H), lambda i: (n_chunks - 1 - i, 0, 0)),  # out bwd (reversed chunks)
                pl.BlockSpec((2, B, H), lambda i: (0, 0, 0)),                # hn
                pl.BlockSpec((2, B, H), lambda i: (0, 0, 0)),                # cn
            ],
            scratch_shapes=[pltpu.VMEM((2, B, H), jnp.float32),              # h carry
                            pltpu.VMEM((2, B, H), jnp.float32)]),            # c carry
        out_shape=[
            jax.ShapeDtypeStruct((T_pad, B, H), jnp.float32),
            jax.ShapeDtypeStruct((T_pad, B, H), jnp.float32),
            jax.ShapeDtypeStruct((2, B, H), jnp.float32),
            jax.ShapeDtypeStruct((2, B, H), jnp.float32),
        ],
        compiler_params=pltpu.CompilerParams(
            dimension_semantics=("arbitrary",)),   # serial recurrence over time
    )(gi_f, gi_b, whh)

    if needs_mask:
        out_f = out_f[:T]
        out_b = out_b[:T]
    return out_f, out_b, hn, cn


# ----------------------------- Parameter setup --------------------------------

def init_params(key, word_size, word_ebd_dim, kernel_num, lstm_hsz, lstm_layers):
    H = lstm_hsz // 2
    params = {}
    key, k_emb = jax.random.split(key)
    # nn.Embedding weight uniform_(-1, 1) per _init_weights.
    params["word_ebd"] = jax.random.uniform(
        k_emb, (word_size, word_ebd_dim), jnp.float32, -1.0, 1.0)

    stdv = 1.0 / jnp.sqrt(jnp.float32(H))  # PyTorch LSTM default init
    for layer in range(lstm_layers):
        d_in = (word_ebd_dim + kernel_num) if layer == 0 else lstm_hsz
        for direction in ("fwd", "bwd"):
            key, k1, k2, k3, k4 = jax.random.split(key, 5)
            wih = jax.random.uniform(k1, (4 * H, d_in), jnp.float32, -stdv, stdv)
            whh = jax.random.uniform(k2, (4 * H, H), jnp.float32, -stdv, stdv)
            bih = jax.random.uniform(k3, (4 * H,), jnp.float32, -stdv, stdv)
            bhh = jax.random.uniform(k4, (4 * H,), jnp.float32, -stdv, stdv)
            p = f"l{layer}_{direction}"
            params[f"wih_t_{p}"] = wih.T          # (d_in, 4H)
            params[f"whh_t_{p}"] = whh.T          # (H, 4H)
            params[f"b_{p}"] = bih + bhh          # (4H,)
    return params


# ----------------------------- Forward (wrapper) ------------------------------

@functools.partial(jax.jit, static_argnames=("lstm_layers", "time_chunk"))
def bilstm_forward(params, words, char_feats, lstm_layers, time_chunk=128):
    # Embedding lookup (plain XLA gather). The torch.cat((char_feats, emb)) is
    # folded into the layer-0 input projection by splitting W_ih rows.
    emb = jnp.take(params["word_ebd"], words, axis=0)               # (B, T, E)
    char_t = jnp.transpose(char_feats, (1, 0, 2)).astype(jnp.float32)  # (T, B, K)
    emb_t = jnp.transpose(emb, (1, 0, 2)).astype(jnp.float32)          # (T, B, E)
    x_parts = (char_t, emb_t)   # matches cat((char_feats, encode), dim=-1)

    h_list, c_list = [], []
    for layer in range(lstm_layers):
        pf, pb = f"l{layer}_fwd", f"l{layer}_bwd"
        out_f, out_b, hn, cn = bilstm_layer(
            x_parts,
            params[f"wih_t_{pf}"], params[f"whh_t_{pf}"], params[f"b_{pf}"],
            params[f"wih_t_{pb}"], params[f"whh_t_{pb}"], params[f"b_{pb}"],
            time_chunk=time_chunk)
        # TODO(synk): inter-layer dropout omitted (eval-mode semantics; identity).
        x_parts = (out_f, out_b)   # next layer consumes split halves (no concat)
        h_list.append(hn)          # PyTorch order: layer*2 + direction
        c_list.append(cn)

    out = jnp.concatenate([x_parts[0], x_parts[1]], axis=-1)    # (T, B, 2H)
    output = jnp.transpose(out, (1, 0, 2))                      # (B, T, lstm_hsz)
    h_n = jnp.concatenate(h_list, axis=0)                       # (layers*2, B, H)
    c_n = jnp.concatenate(c_list, axis=0)                       # (layers*2, B, H)
    return output, (h_n, c_n)


# ----------------------------------- Main --------------------------------------

if __name__ == "__main__":
    # Small, module-consistent shapes.
    word_size, word_ebd_dim = 50, 12
    kernel_num = 4
    lstm_hsz, lstm_layers = 32, 2
    batch_size, seq_len = 2, 8

    key = jax.random.PRNGKey(0)
    key, k_p, k_w, k_c = jax.random.split(key, 4)

    params = init_params(k_p, word_size, word_ebd_dim, kernel_num,
                         lstm_hsz, lstm_layers)

    words = jax.random.randint(k_w, (batch_size, seq_len), 0, word_size, jnp.int32)
    char_feats = jax.random.normal(k_c, (batch_size, seq_len, kernel_num),
                                   jnp.float32)

    # time_chunk=4 so the 8-step demo exercises the multi-chunk pipeline
    # (scratch-carried state, reversed bwd chunk index_map). Tune larger
    # (128-512) for production T.
    output, (h_n, c_n) = bilstm_forward(params, words, char_feats,
                                        lstm_layers, time_chunk=4)
    jax.block_until_ready((output, h_n, c_n))

    assert output.shape == (batch_size, seq_len, lstm_hsz)
    assert h_n.shape == (lstm_layers * 2, batch_size, lstm_hsz // 2)
    assert c_n.shape == (lstm_layers * 2, batch_size, lstm_hsz // 2)
    assert bool(jnp.all(jnp.isfinite(output)))
    print("KERNEL_OK")
</pallas_src>

<mosaic_0001>
module attributes {stable_mosaic.version = 11 : i64} {
  func.func @_bilstm_layer_kernel(%arg0: i32, %arg1: memref<4x2x64xbf16, #tpu.memory_space<vmem>>, %arg2: memref<4x2x64xbf16, #tpu.memory_space<vmem>>, %arg3: memref<2x16x64xbf16, #tpu.memory_space<vmem>>, %arg4: memref<4x2x16xf32, #tpu.memory_space<vmem>>, %arg5: memref<4x2x16xf32, #tpu.memory_space<vmem>>, %arg6: memref<2x2x16xf32, #tpu.memory_space<vmem>>, %arg7: memref<2x2x16xf32, #tpu.memory_space<vmem>>, %arg8: memref<2x2x16xf32, #tpu.memory_space<vmem>>, %arg9: memref<2x2x16xf32, #tpu.memory_space<vmem>>) attributes {dimension_semantics = [#tpu.dimension_semantics<arbitrary>], iteration_bounds = array<i64: 2>, scalar_prefetch = 0 : i64, scratch_operands = 2 : i64, tpu.core_type = #tpu.core_type<tc>, window_params = [{transform_indices = @transform_0, window_bounds = array<i64: 4, 2, 64>}, {transform_indices = @transform_1, window_bounds = array<i64: 4, 2, 64>}, {pipeline_mode = #tpu.pipeline_mode<synchronous>, transform_indices = @transform_2, window_bounds = array<i64: 2, 16, 64>}, {transform_indices = @transform_3, window_bounds = array<i64: 4, 2, 16>}, {transform_indices = @transform_4, window_bounds = array<i64: 4, 2, 16>}, {pipeline_mode = #tpu.pipeline_mode<synchronous>, transform_indices = @transform_5, window_bounds = array<i64: 2, 2, 16>}, {pipeline_mode = #tpu.pipeline_mode<synchronous>, transform_indices = @transform_6, window_bounds = array<i64: 2, 2, 16>}]} {
    %c0_i32 = arith.constant 0 : i32
    %0 = arith.cmpi eq, %arg0, %c0_i32 : i32
    %1 = arith.extui %0 : i1 to i32
    %c0_i32_0 = arith.constant 0 : i32
    %2 = arith.cmpi ne, %1, %c0_i32_0 : i32
    scf.if %2 {
      %cst_73 = arith.constant 0.000000e+00 : f32
      %214 = vector.broadcast %cst_73 : f32 to vector<2x2x16xf32>
      %c0_74 = arith.constant 0 : index
      %c0_75 = arith.constant 0 : index
      %c0_76 = arith.constant 0 : index
      %215 = vector.load %arg8[%c0_74, %c0_75, %c0_76] : memref<2x2x16xf32, #tpu.memory_space<vmem>>, vector<2x2x16xf32>
      tpu.vector_store %arg8[%c0_74, %c0_75, %c0_76], %214 {strides = array<i32>} : memref<2x2x16xf32, #tpu.memory_space<vmem>>, vector<2x2x16xf32>,
      %cst_77 = arith.constant 0.000000e+00 : f32
      %216 = vector.broadcast %cst_77 : f32 to vector<2x2x16xf32>
      %c0_78 = arith.constant 0 : index
      %c0_79 = arith.constant 0 : index
      %c0_80 = arith.constant 0 : index
      %217 = vector.load %arg9[%c0_78, %c0_79, %c0_80] : memref<2x2x16xf32, #tpu.memory_space<vmem>>, vector<2x2x16xf32>
      tpu.vector_store %arg9[%c0_78, %c0_79, %c0_80], %216 {strides = array<i32>} : memref<2x2x16xf32, #tpu.memory_space<vmem>>, vector<2x2x16xf32>,
    } else {
    }
    %c0 = arith.constant 0 : index
    %c0_1 = arith.constant 0 : index
    %c0_2 = arith.constant 0 : index
    %3 = vector.load %arg3[%c0, %c0_1, %c0_2] : memref<2x16x64xbf16, #tpu.memory_space<vmem>>, vector<2x16x64xbf16>
    %c0_3 = arith.constant 0 : index
    %c0_4 = arith.constant 0 : index
    %c0_5 = arith.constant 0 : index
    %4 = vector.load %arg8[%c0_3, %c0_4, %c0_5] : memref<2x2x16xf32, #tpu.memory_space<vmem>>, vector<2x2x16xf32>
    %c0_6 = arith.constant 0 : index
    %c0_7 = arith.constant 0 : index
    %c0_8 = arith.constant 0 : index
    %5 = vector.load %arg9[%c0_6, %c0_7, %c0_8] : memref<2x2x16xf32, #tpu.memory_space<vmem>>, vector<2x2x16xf32>
    %c0_i32_9 = arith.constant 0 : i32
    %6 = arith.truncf %4 : vector<2x2x16xf32> to vector<2x2x16xbf16>
    %cst = arith.constant dense<0.000000e+00> : vector<2x2x64xf32>
    %7 = tpu.matmul %6, %3, %cst {dimension_numbers = #tpu.dot_dimension_numbers<[2], [1], [1], [2], [0, 0, 0, 1, 1, 2], [0], [0]>} : vector<2x2x16xbf16>, vector<2x16x64xbf16>, vector<2x2x64xf32> -> vector<2x2x64xf32>
    %c3_i32 = arith.constant 3 : i32
    %8 = arith.subi %c3_i32, %c0_i32_9 : i32
    %9 = arith.index_cast %c0_i32_9 : i32 to index
    %c0_10 = arith.constant 0 : index
    %c0_11 = arith.constant 0 : index
    %10 = vector.load %arg1[%9, %c0_10, %c0_11] : memref<4x2x64xbf16, #tpu.memory_space<vmem>>, vector<1x2x64xbf16>
    %11 = vector.shape_cast %10 : vector<1x2x64xbf16> to vector<2x64xbf16>
    %12 = arith.index_cast %8 : i32 to index
    %c0_12 = arith.constant 0 : index
    %c0_13 = arith.constant 0 : index
    %13 = vector.load %arg2[%12, %c0_12, %c0_13] : memref<4x2x64xbf16, #tpu.memory_space<vmem>>, vector<1x2x64xbf16>
    %14 = vector.shape_cast %13 : vector<1x2x64xbf16> to vector<2x64xbf16>
    %15 = vector.shape_cast %11 : vector<2x64xbf16> to vector<1x2x64xbf16>
    %16 = vector.shape_cast %14 : vector<2x64xbf16> to vector<1x2x64xbf16>
    %17 = tpu.concatenate %15, %16 in 0 : vector<1x2x64xbf16>, vector<1x2x64xbf16> -> vector<2x2x64xbf16>
    %18 = arith.extf %17 : vector<2x2x64xbf16> to vector<2x2x64xf32>
    %19 = arith.addf %18, %7 : vector<2x2x64xf32>
    %20 = vector.extract_strided_slice %19 {offsets = [0, 0, 0], sizes = [2, 2, 16], strides = [1, 1, 1]} : vector<2x2x64xf32> to vector<2x2x16xf32>
    %21 = arith.negf %20 : vector<2x2x16xf32>
    %22 = math.exp %21 : vector<2x2x16xf32>
    %cst_14 = arith.constant 1.000000e+00 : f32
    %23 = vector.broadcast %cst_14 : f32 to vector<2x2x16xf32>
    %24 = arith.addf %23, %22 : vector<2x2x16xf32>
    %25 = arith.divf %23, %24 : vector<2x2x16xf32>
    %26 = vector.extract_strided_slice %19 {offsets = [0, 0, 16], sizes = [2, 2, 16], strides = [1, 1, 1]} : vector<2x2x64xf32> to vector<2x2x16xf32>
    %27 = arith.negf %26 : vector<2x2x16xf32>
    %28 = math.exp %27 : vector<2x2x16xf32>
    %cst_15 = arith.constant 1.000000e+00 : f32
    %29 = vector.broadcast %cst_15 : f32 to vector<2x2x16xf32>
    %30 = arith.addf %29, %28 : vector<2x2x16xf32>
    %31 = arith.divf %29, %30 : vector<2x2x16xf32>
    %32 = vector.extract_strided_slice %19 {offsets = [0, 0, 32], sizes = [2, 2, 16], strides = [1, 1, 1]} : vector<2x2x64xf32> to vector<2x2x16xf32>
    %33 = math.tanh %32 : vector<2x2x16xf32>
    %34 = vector.extract_strided_slice %19 {offsets = [0, 0, 48], sizes = [2, 2, 16], strides = [1, 1, 1]} : vector<2x2x64xf32> to vector<2x2x16xf32>
    %35 = arith.negf %34 : vector<2x2x16xf32>
    %36 = math.exp %35 : vector<2x2x16xf32>
    %cst_16 = arith.constant 1.000000e+00 : f32
    %37 = vector.broadcast %cst_16 : f32 to vector<2x2x16xf32>
    %38 = arith.addf %37, %36 : vector<2x2x16xf32>
    %39 = arith.divf %37, %38 : vector<2x2x16xf32>
    %40 = arith.mulf %31, %5 : vector<2x2x16xf32>
    %41 = arith.mulf %25, %33 : vector<2x2x16xf32>
    %42 = arith.addf %40, %41 : vector<2x2x16xf32>
    %43 = math.tanh %42 : vector<2x2x16xf32>
    %44 = arith.mulf %39, %43 : vector<2x2x16xf32>
    %45 = vector.extract_strided_slice %44 {offsets = [0, 0, 0], sizes = [1, 2, 16], strides = [1, 1, 1]} : vector<2x2x16xf32> to vector<1x2x16xf32>
    %46 = vector.shape_cast %45 : vector<1x2x16xf32> to vector<2x16xf32>
    %47 = arith.index_cast %c0_i32_9 : i32 to index
    %c0_17 = arith.constant 0 : index
    %c0_18 = arith.constant 0 : index
    %48 = vector.load %arg4[%47, %c0_17, %c0_18] : memref<4x2x16xf32, #tpu.memory_space<vmem>>, vector<1x2x16xf32>
    %49 = vector.shape_cast %48 : vector<1x2x16xf32> to vector<2x16xf32>
    %50 = vector.shape_cast %46 : vector<2x16xf32> to vector<1x2x16xf32>
    tpu.vector_store %arg4[%47, %c0_17, %c0_18], %50 {strides = array<i32>} : memref<4x2x16xf32, #tpu.memory_space<vmem>>, vector<1x2x16xf32>,
    %51 = vector.extract_strided_slice %44 {offsets = [1, 0, 0], sizes = [1, 2, 16], strides = [1, 1, 1]} : vector<2x2x16xf32> to vector<1x2x16xf32>
    %52 = vector.shape_cast %51 : vector<1x2x16xf32> to vector<2x16xf32>
    %53 = arith.index_cast %8 : i32 to index
    %c0_19 = arith.constant 0 : index
    %c0_20 = arith.constant 0 : index
    %54 = vector.load %arg5[%53, %c0_19, %c0_20] : memref<4x2x16xf32, #tpu.memory_space<vmem>>, vector<1x2x16xf32>
    %55 = vector.shape_cast %54 : vector<1x2x16xf32> to vector<2x16xf32>
    %56 = vector.shape_cast %52 : vector<2x16xf32> to vector<1x2x16xf32>
    tpu.vector_store %arg5[%53, %c0_19, %c0_20], %56 {strides = array<i32>} : memref<4x2x16xf32, #tpu.memory_space<vmem>>, vector<1x2x16xf32>,
    %c1_i32 = arith.constant 1 : i32
    %57 = arith.truncf %44 : vector<2x2x16xf32> to vector<2x2x16xbf16>
    %cst_21 = arith.constant dense<0.000000e+00> : vector<2x2x64xf32>
    %58 = tpu.matmul %57, %3, %cst_21 {dimension_numbers = #tpu.dot_dimension_numbers<[2], [1], [1], [2], [0, 0, 0, 1, 1, 2], [0], [0]>} : vector<2x2x16xbf16>, vector<2x16x64xbf16>, vector<2x2x64xf32> -> vector<2x2x64xf32>
    %c3_i32_22 = arith.constant 3 : i32
    %59 = arith.subi %c3_i32_22, %c1_i32 : i32
    %60 = arith.index_cast %c1_i32 : i32 to index
    %c0_23 = arith.constant 0 : index
    %c0_24 = arith.constant 0 : index
    %61 = vector.load %arg1[%60, %c0_23, %c0_24] : memref<4x2x64xbf16, #tpu.memory_space<vmem>>, vector<1x2x64xbf16>
    %62 = vector.shape_cast %61 : vector<1x2x64xbf16> to vector<2x64xbf16>
    %63 = arith.index_cast %59 : i32 to index
    %c0_25 = arith.constant 0 : index
    %c0_26 = arith.constant 0 : index
    %64 = vector.load %arg2[%63, %c0_25, %c0_26] : memref<4x2x64xbf16, #tpu.memory_space<vmem>>, vector<1x2x64xbf16>
    %65 = vector.shape_cast %64 : vector<1x2x64xbf16> to vector<2x64xbf16>
    %66 = vector.shape_cast %62 : vector<2x64xbf16> to vector<1x2x64xbf16>
    %67 = vector.shape_cast %65 : vector<2x64xbf16> to vector<1x2x64xbf16>
    %68 = tpu.concatenate %66, %67 in 0 : vector<1x2x64xbf16>, vector<1x2x64xbf16> -> vector<2x2x64xbf16>
    %69 = arith.extf %68 : vector<2x2x64xbf16> to vector<2x2x64xf32>
    %70 = arith.addf %69, %58 : vector<2x2x64xf32>
    %71 = vector.extract_strided_slice %70 {offsets = [0, 0, 0], sizes = [2, 2, 16], strides = [1, 1, 1]} : vector<2x2x64xf32> to vector<2x2x16xf32>
    %72 = arith.negf %71 : vector<2x2x16xf32>
    %73 = math.exp %72 : vector<2x2x16xf32>
    %cst_27 = arith.constant 1.000000e+00 : f32
    %74 = vector.broadcast %cst_27 : f32 to vector<2x2x16xf32>
    %75 = arith.addf %74, %73 : vector<2x2x16xf32>
    %76 = arith.divf %74, %75 : vector<2x2x16xf32>
    %77 = vector.extract_strided_slice %70 {offsets = [0, 0, 16], sizes = [2, 2, 16], strides = [1, 1, 1]} : vector<2x2x64xf32> to vector<2x2x16xf32>
    %78 = arith.negf %77 : vector<2x2x16xf32>
    %79 = math.exp %78 : vector<2x2x16xf32>
    %cst_28 = arith.constant 1.000000e+00 : f32
    %80 = vector.broadcast %cst_28 : f32 to vector<2x2x16xf32>
    %81 = arith.addf %80, %79 : vector<2x2x16xf32>
    %82 = arith.divf %80, %81 : vector<2x2x16xf32>
    %83 = vector.extract_strided_slice %70 {offsets = [0, 0, 32], sizes = [2, 2, 16], strides = [1, 1, 1]} : vector<2x2x64xf32> to vector<2x2x16xf32>
    %84 = math.tanh %83 : vector<2x2x16xf32>
    %85 = vector.extract_strided_slice %70 {offsets = [0, 0, 48], sizes = [2, 2, 16], strides = [1, 1, 1]} : vector<2x2x64xf32> to vector<2x2x16xf32>
    %86 = arith.negf %85 : vector<2x2x16xf32>
    %87 = math.exp %86 : vector<2x2x16xf32>
    %cst_29 = arith.constant 1.000000e+00 : f32
    %88 = vector.broadcast %cst_29 : f32 to vector<2x2x16xf32>
    %89 = arith.addf %88, %87 : vector<2x2x16xf32>
    %90 = arith.divf %88, %89 : vector<2x2x16xf32>
    %91 = arith.mulf %82, %42 : vector<2x2x16xf32>
    %92 = arith.mulf %76, %84 : vector<2x2x16xf32>
    %93 = arith.addf %91, %92 : vector<2x2x16xf32>
    %94 = math.tanh %93 : vector<2x2x16xf32>
    %95 = arith.mulf %90, %94 : vector<2x2x16xf32>
    %96 = vector.extract_strided_slice %95 {offsets = [0, 0, 0], sizes = [1, 2, 16], strides = [1, 1, 1]} : vector<2x2x16xf32> to vector<1x2x16xf32>
    %97 = vector.shape_cast %96 : vector<1x2x16xf32> to vector<2x16xf32>
    %98 = arith.index_cast %c1_i32 : i32 to index
    %c0_30 = arith.constant 0 : index
    %c0_31 = arith.constant 0 : index
    %99 = vector.load %arg4[%98, %c0_30, %c0_31] : memref<4x2x16xf32, #tpu.memory_space<vmem>>, vector<1x2x16xf32>
    %100 = vector.shape_cast %99 : vector<1x2x16xf32> to vector<2x16xf32>
    %101 = vector.shape_cast %97 : vector<2x16xf32> to vector<1x2x16xf32>
    tpu.vector_store %arg4[%98, %c0_30, %c0_31], %101 {strides = array<i32>} : memref<4x2x16xf32, #tpu.memory_space<vmem>>, vector<1x2x16xf32>,
    %102 = vector.extract_strided_slice %95 {offsets = [1, 0, 0], sizes = [1, 2, 16], strides = [1, 1, 1]} : vector<2x2x16xf32> to vector<1x2x16xf32>
    %103 = vector.shape_cast %102 : vector<1x2x16xf32> to vector<2x16xf32>
    %104 = arith.index_cast %59 : i32 to index
    %c0_32 = arith.constant 0 : index
    %c0_33 = arith.constant 0 : index
    %105 = vector.load %arg5[%104, %c0_32, %c0_33] : memref<4x2x16xf32, #tpu.memory_space<vmem>>, vector<1x2x16xf32>
    %106 = vector.shape_cast %105 : vector<1x2x16xf32> to vector<2x16xf32>
    %107 = vector.shape_cast %103 : vector<2x16xf32> to vector<1x2x16xf32>
    tpu.vector_store %arg5[%104, %c0_32, %c0_33], %107 {strides = array<i32>} : memref<4x2x16xf32, #tpu.memory_space<vmem>>, vector<1x2x16xf32>,
    %c2_i32 = arith.constant 2 : i32
    %108 = arith.truncf %95 : vector<2x2x16xf32> to vector<2x2x16xbf16>
    %cst_34 = arith.constant dense<0.000000e+00> : vector<2x2x64xf32>
    %109 = tpu.matmul %108, %3, %cst_34 {dimension_numbers = #tpu.dot_dimension_numbers<[2], [1], [1], [2], [0, 0, 0, 1, 1, 2], [0], [0]>} : vector<2x2x16xbf16>, vector<2x16x64xbf16>, vector<2x2x64xf32> -> vector<2x2x64xf32>
    %c3_i32_35 = arith.constant 3 : i32
    %110 = arith.subi %c3_i32_35, %c2_i32 : i32
    %111 = arith.index_cast %c2_i32 : i32 to index
    %c0_36 = arith.constant 0 : index
    %c0_37 = arith.constant 0 : index
    %112 = vector.load %arg1[%111, %c0_36, %c0_37] : memref<4x2x64xbf16, #tpu.memory_space<vmem>>, vector<1x2x64xbf16>
    %113 = vector.shape_cast %112 : vector<1x2x64xbf16> to vector<2x64xbf16>
    %114 = arith.index_cast %110 : i32 to index
    %c0_38 = arith.constant 0 : index
    %c0_39 = arith.constant 0 : index
    %115 = vector.load %arg2[%114, %c0_38, %c0_39] : memref<4x2x64xbf16, #tpu.memory_space<vmem>>, vector<1x2x64xbf16>
    %116 = vector.shape_cast %115 : vector<1x2x64xbf16> to vector<2x64xbf16>
    %117 = vector.shape_cast %113 : vector<2x64xbf16> to vector<1x2x64xbf16>
    %118 = vector.shape_cast %116 : vector<2x64xbf16> to vector<1x2x64xbf16>
    %119 = tpu.concatenate %117, %118 in 0 : vector<1x2x64xbf16>, vector<1x2x64xbf16> -> vector<2x2x64xbf16>
    %120 = arith.extf %119 : vector<2x2x64xbf16> to vector<2x2x64xf32>
    %121 = arith.addf %120, %109 : vector<2x2x64xf32>
    %122 = vector.extract_strided_slice %121 {offsets = [0, 0, 0], sizes = [2, 2, 16], strides = [1, 1, 1]} : vector<2x2x64xf32> to vector<2x2x16xf32>
    %123 = arith.negf %122 : vector<2x2x16xf32>
    %124 = math.exp %123 : vector<2x2x16xf32>
    %cst_40 = arith.constant 1.000000e+00 : f32
    %125 = vector.broadcast %cst_40 : f32 to vector<2x2x16xf32>
    %126 = arith.addf %125, %124 : vector<2x2x16xf32>
    %127 = arith.divf %125, %126 : vector<2x2x16xf32>
    %128 = vector.extract_strided_slice %121 {offsets = [0, 0, 16], sizes = [2, 2, 16], strides = [1, 1, 1]} : vector<2x2x64xf32> to vector<2x2x16xf32>
    %129 = arith.negf %128 : vector<2x2x16xf32>
    %130 = math.exp %129 : vector<2x2x16xf32>
    %cst_41 = arith.constant 1.000000e+00 : f32
    %131 = vector.broadcast %cst_41 : f32 to vector<2x2x16xf32>
    %132 = arith.addf %131, %130 : vector<2x2x16xf32>
    %133 = arith.divf %131, %132 : vector<2x2x16xf32>
    %134 = vector.extract_strided_slice %121 {offsets = [0, 0, 32], sizes = [2, 2, 16], strides = [1, 1, 1]} : vector<2x2x64xf32> to vector<2x2x16xf32>
    %135 = math.tanh %134 : vector<2x2x16xf32>
    %136 = vector.extract_strided_slice %121 {offsets = [0, 0, 48], sizes = [2, 2, 16], strides = [1, 1, 1]} : vector<2x2x64xf32> to vector<2x2x16xf32>
    %137 = arith.negf %136 : vector<2x2x16xf32>
    %138 = math.exp %137 : vector<2x2x16xf32>
    %cst_42 = arith.constant 1.000000e+00 : f32
    %139 = vector.broadcast %cst_42 : f32 to vector<2x2x16xf32>
    %140 = arith.addf %139, %138 : vector<2x2x16xf32>
    %141 = arith.divf %139, %140 : vector<2x2x16xf32>
    %142 = arith.mulf %133, %93 : vector<2x2x16xf32>
    %143 = arith.mulf %127, %135 : vector<2x2x16xf32>
    %144 = arith.addf %142, %143 : vector<2x2x16xf32>
    %145 = math.tanh %144 : vector<2x2x16xf32>
    %146 = arith.mulf %141, %145 : vector<2x2x16xf32>
    %147 = vector.extract_strided_slice %146 {offsets = [0, 0, 0], sizes = [1, 2, 16], strides = [1, 1, 1]} : vector<2x2x16xf32> to vector<1x2x16xf32>
    %148 = vector.shape_cast %147 : vector<1x2x16xf32> to vector<2x16xf32>
    %149 = arith.index_cast %c2_i32 : i32 to index
    %c0_43 = arith.constant 0 : index
    %c0_44 = arith.constant 0 : index
    %150 = vector.load %arg4[%149, %c0_43, %c0_44] : memref<4x2x16xf32, #tpu.memory_space<vmem>>, vector<1x2x16xf32>
    %151 = vector.shape_cast %150 : vector<1x2x16xf32> to vector<2x16xf32>
    %152 = vector.shape_cast %148 : vector<2x16xf32> to vector<1x2x16xf32>
    tpu.vector_store %arg4[%149, %c0_43, %c0_44], %152 {strides = array<i32>} : memref<4x2x16xf32, #tpu.memory_space<vmem>>, vector<1x2x16xf32>,
    %153 = vector.extract_strided_slice %146 {offsets = [1, 0, 0], sizes = [1, 2, 16], strides = [1, 1, 1]} : vector<2x2x16xf32> to vector<1x2x16xf32>
    %154 = vector.shape_cast %153 : vector<1x2x16xf32> to vector<2x16xf32>
    %155 = arith.index_cast %110 : i32 to index
    %c0_45 = arith.constant 0 : index
    %c0_46 = arith.constant 0 : index
    %156 = vector.load %arg5[%155, %c0_45, %c0_46] : memref<4x2x16xf32, #tpu.memory_space<vmem>>, vector<1x2x16xf32>
    %157 = vector.shape_cast %156 : vector<1x2x16xf32> to vector<2x16xf32>
    %158 = vector.shape_cast %154 : vector<2x16xf32> to vector<1x2x16xf32>
    tpu.vector_store %arg5[%155, %c0_45, %c0_46], %158 {strides = array<i32>} : memref<4x2x16xf32, #tpu.memory_space<vmem>>, vector<1x2x16xf32>,
    %c3_i32_47 = arith.constant 3 : i32
    %159 = arith.truncf %146 : vector<2x2x16xf32> to vector<2x2x16xbf16>
    %cst_48 = arith.constant dense<0.000000e+00> : vector<2x2x64xf32>
    %160 = tpu.matmul %159, %3, %cst_48 {dimension_numbers = #tpu.dot_dimension_numbers<[2], [1], [1], [2], [0, 0, 0, 1, 1, 2], [0], [0]>} : vector<2x2x16xbf16>, vector<2x16x64xbf16>, vector<2x2x64xf32> -> vector<2x2x64xf32>
    %c3_i32_49 = arith.constant 3 : i32
    %161 = arith.subi %c3_i32_49, %c3_i32_47 : i32
    %162 = arith.index_cast %c3_i32_47 : i32 to index
    %c0_50 = arith.constant 0 : index
    %c0_51 = arith.constant 0 : index
    %163 = vector.load %arg1[%162, %c0_50, %c0_51] : memref<4x2x64xbf16, #tpu.memory_space<vmem>>, vector<1x2x64xbf16>
    %164 = vector.shape_cast %163 : vector<1x2x64xbf16> to vector<2x64xbf16>
    %165 = arith.index_cast %161 : i32 to index
    %c0_52 = arith.constant 0 : index
    %c0_53 = arith.constant 0 : index
    %166 = vector.load %arg2[%165, %c0_52, %c0_53] : memref<4x2x64xbf16, #tpu.memory_space<vmem>>, vector<1x2x64xbf16>
    %167 = vector.shape_cast %166 : vector<1x2x64xbf16> to vector<2x64xbf16>
    %168 = vector.shape_cast %164 : vector<2x64xbf16> to vector<1x2x64xbf16>
    %169 = vector.shape_cast %167 : vector<2x64xbf16> to vector<1x2x64xbf16>
    %170 = tpu.concatenate %168, %169 in 0 : vector<1x2x64xbf16>, vector<1x2x64xbf16> -> vector<2x2x64xbf16>
    %171 = arith.extf %170 : vector<2x2x64xbf16> to vector<2x2x64xf32>
    %172 = arith.addf %171, %160 : vector<2x2x64xf32>
    %173 = vector.extract_strided_slice %172 {offsets = [0, 0, 0], sizes = [2, 2, 16], strides = [1, 1, 1]} : vector<2x2x64xf32> to vector<2x2x16xf32>
    %174 = arith.negf %173 : vector<2x2x16xf32>
    %175 = math.exp %174 : vector<2x2x16xf32>
    %cst_54 = arith.constant 1.000000e+00 : f32
    %176 = vector.broadcast %cst_54 : f32 to vector<2x2x16xf32>
    %177 = arith.addf %176, %175 : vector<2x2x16xf32>
    %178 = arith.divf %176, %177 : vector<2x2x16xf32>
    %179 = vector.extract_strided_slice %172 {offsets = [0, 0, 16], sizes = [2, 2, 16], strides = [1, 1, 1]} : vector<2x2x64xf32> to vector<2x2x16xf32>
    %180 = arith.negf %179 : vector<2x2x16xf32>
    %181 = math.exp %180 : vector<2x2x16xf32>
    %cst_55 = arith.constant 1.000000e+00 : f32
    %182 = vector.broadcast %cst_55 : f32 to vector<2x2x16xf32>
    %183 = arith.addf %182, %181 : vector<2x2x16xf32>
    %184 = arith.divf %182, %183 : vector<2x2x16xf32>
    %185 = vector.extract_strided_slice %172 {offsets = [0, 0, 32], sizes = [2, 2, 16], strides = [1, 1, 1]} : vector<2x2x64xf32> to vector<2x2x16xf32>
    %186 = math.tanh %185 : vector<2x2x16xf32>
    %187 = vector.extract_strided_slice %172 {offsets = [0, 0, 48], sizes = [2, 2, 16], strides = [1, 1, 1]} : vector<2x2x64xf32> to vector<2x2x16xf32>
    %188 = arith.negf %187 : vector<2x2x16xf32>
    %189 = math.exp %188 : vector<2x2x16xf32>
    %cst_56 = arith.constant 1.000000e+00 : f32
    %190 = vector.broadcast %cst_56 : f32 to vector<2x2x16xf32>
    %191 = arith.addf %190, %189 : vector<2x2x16xf32>
    %192 = arith.divf %190, %191 : vector<2x2x16xf32>
    %193 = arith.mulf %184, %144 : vector<2x2x16xf32>
    %194 = arith.mulf %178, %186 : vector<2x2x16xf32>
    %195 = arith.addf %193, %194 : vector<2x2x16xf32>
    %196 = math.tanh %195 : vector<2x2x16xf32>
    %197 = arith.mulf %192, %196 : vector<2x2x16xf32>
    %198 = vector.extract_strided_slice %197 {offsets = [0, 0, 0], sizes = [1, 2, 16], strides = [1, 1, 1]} : vector<2x2x16xf32> to vector<1x2x16xf32>
    %199 = vector.shape_cast %198 : vector<1x2x16xf32> to vector<2x16xf32>
    %200 = arith.index_cast %c3_i32_47 : i32 to index
    %c0_57 = arith.constant 0 : index
    %c0_58 = arith.constant 0 : index
    %201 = vector.load %arg4[%200, %c0_57, %c0_58] : memref<4x2x16xf32, #tpu.memory_space<vmem>>, vector<1x2x16xf32>
    %202 = vector.shape_cast %201 : vector<1x2x16xf32> to vector<2x16xf32>
    %203 = vector.shape_cast %199 : vector<2x16xf32> to vector<1x2x16xf32>
    tpu.vector_store %arg4[%200, %c0_57, %c0_58], %203 {strides = array<i32>} : memref<4x2x16xf32, #tpu.memory_space<vmem>>, vector<1x2x16xf32>,
    %204 = vector.extract_strided_slice %197 {offsets = [1, 0, 0], sizes = [1, 2, 16], strides = [1, 1, 1]} : vector<2x2x16xf32> to vector<1x2x16xf32>
    %205 = vector.shape_cast %204 : vector<1x2x16xf32> to vector<2x16xf32>
    %206 = arith.index_cast %161 : i32 to index
    %c0_59 = arith.constant 0 : index
    %c0_60 = arith.constant 0 : index
    %207 = vector.load %arg5[%206, %c0_59, %c0_60] : memref<4x2x16xf32, #tpu.memory_space<vmem>>, vector<1x2x16xf32>
    %208 = vector.shape_cast %207 : vector<1x2x16xf32> to vector<2x16xf32>
    %209 = vector.shape_cast %205 : vector<2x16xf32> to vector<1x2x16xf32>
    tpu.vector_store %arg5[%206, %c0_59, %c0_60], %209 {strides = array<i32>} : memref<4x2x16xf32, #tpu.memory_space<vmem>>, vector<1x2x16xf32>,
    %c4_i32 = arith.constant 4 : i32
    %c0_61 = arith.constant 0 : index
    %c0_62 = arith.constant 0 : index
    %c0_63 = arith.constant 0 : index
    %210 = vector.load %arg8[%c0_61, %c0_62, %c0_63] : memref<2x2x16xf32, #tpu.memory_space<vmem>>, vector<2x2x16xf32>
    tpu.vector_store %arg8[%c0_61, %c0_62, %c0_63], %197 {strides = array<i32>} : memref<2x2x16xf32, #tpu.memory_space<vmem>>, vector<2x2x16xf32>,
    %c0_64 = arith.constant 0 : index
    %c0_65 = arith.constant 0 : index
    %c0_66 = arith.constant 0 : index
    %211 = vector.load %arg9[%c0_64, %c0_65, %c0_66] : memref<2x2x16xf32, #tpu.memory_space<vmem>>, vector<2x2x16xf32>
    tpu.vector_store %arg9[%c0_64, %c0_65, %c0_66], %195 {strides = array<i32>} : memref<2x2x16xf32, #tpu.memory_space<vmem>>, vector<2x2x16xf32>,
    %c0_67 = arith.constant 0 : index
    %c0_68 = arith.constant 0 : index
    %c0_69 = arith.constant 0 : index
    %212 = vector.load %arg6[%c0_67, %c0_68, %c0_69] : memref<2x2x16xf32, #tpu.memory_space<vmem>>, vector<2x2x16xf32>
    tpu.vector_store %arg6[%c0_67, %c0_68, %c0_69], %197 {strides = array<i32>} : memref<2x2x16xf32, #tpu.memory_space<vmem>>, vector<2x2x16xf32>,
    %c0_70 = arith.constant 0 : index
    %c0_71 = arith.constant 0 : index
    %c0_72 = arith.constant 0 : index
    %213 = vector.load %arg7[%c0_70, %c0_71, %c0_72] : memref<2x2x16xf32, #tpu.memory_space<vmem>>, vector<2x2x16xf32>
    tpu.vector_store %arg7[%c0_70, %c0_71, %c0_72], %195 {strides = array<i32>} : memref<2x2x16xf32, #tpu.memory_space<vmem>>, vector<2x2x16xf32>,
    return
  }
  func.func @transform_0(%arg0: i32) -> (i32, i32, i32) {
    %c0_i32 = arith.constant 0 : i32
    %c0_i32_0 = arith.constant 0 : i32
    %c0_i32_1 = arith.constant 0 : i32
    return %arg0, %c0_i32, %c0_i32_0 : i32, i32, i32
  }
  func.func @transform_1(%arg0: i32) -> (i32, i32, i32) {
    %c1_i32 = arith.constant 1 : i32
    %0 = arith.subi %c1_i32, %arg0 : i32
    %c0_i32 = arith.constant 0 : i32
    %c0_i32_0 = arith.constant 0 : i32
    %c0_i32_1 = arith.constant 0 : i32
    return %0, %c0_i32, %c0_i32_0 : i32, i32, i32
  }
  func.func @transform_2(%arg0: i32) -> (i32, i32, i32) {
    %c0_i32 = arith.constant 0 : i32
    %c0_i32_0 = arith.constant 0 : i32
    %c0_i32_1 = arith.constant 0 : i32
    %c0_i32_2 = arith.constant 0 : i32
    return %c0_i32, %c0_i32_0, %c0_i32_1 : i32, i32, i32
  }
  func.func @transform_3(%arg0: i32) -> (i32, i32, i32) {
    %c0_i32 = arith.constant 0 : i32
    %c0_i32_0 = arith.constant 0 : i32
    %c0_i32_1 = arith.constant 0 : i32
    return %arg0, %c0_i32, %c0_i32_0 : i32, i32, i32
  }
  func.func @transform_4(%arg0: i32) -> (i32, i32, i32) {
    %c1_i32 = arith.constant 1 : i32
    %0 = arith.subi %c1_i32, %arg0 : i32
    %c0_i32 = arith.constant 0 : i32
    %c0_i32_0 = arith.constant 0 : i32
    %c0_i32_1 = arith.constant 0 : i32
    return %0, %c0_i32, %c0_i32_0 : i32, i32, i32
  }
  func.func @transform_5(%arg0: i32) -> (i32, i32, i32) {
    %c0_i32 = arith.constant 0 : i32
    %c0_i32_0 = arith.constant 0 : i32
    %c0_i32_1 = arith.constant 0 : i32
    %c0_i32_2 = arith.constant 0 : i32
    return %c0_i32, %c0_i32_0, %c0_i32_1 : i32, i32, i32
  }
  func.func @transform_6(%arg0: i32) -> (i32, i32, i32) {
    %c0_i32 = arith.constant 0 : i32
    %c0_i32_0 = arith.constant 0 : i32
    %c0_i32_1 = arith.constant 0 : i32
    %c0_i32_2 = arith.constant 0 : i32
    return %c0_i32, %c0_i32_0, %c0_i32_1 : i32, i32, i32
  }
}

</mosaic_0001>

<bundles_post_ra>
// kernel: bilstm_forward.2
= control target key start
LH: loop header
LB: loop body
LE: loop exit
PB: predicated region body
PF: predicated region fallthrough
CT: control target
= control target key end

     0   :  { %s1425_s21 = smov 0   ;;  %s1636_s0 = inlined_call_operand.vmem [shape: bf16[8,2,64], index: 0, kind: input, shape index: {}]   ;;  %s1637_s1 = inlined_call_operand.vmem [shape: bf16[8,2,64], index: 1, kind: input, shape index: {}]   ;;  %s1638_s2 = inlined_call_operand.vmem [shape: bf16[2,16,64], index: 2, kind: input, shape index: {}]   ;;  %s1639_s3 = inlined_call_operand.vmem [shape: f32[8,2,16], index: 3, kind: output, shape index: {0}]   ;;  %s1640_s4 = inlined_call_operand.vmem [shape: f32[8,2,16], index: 4, kind: output, shape index: {1}]   ;;  %s1641_s5 = inlined_call_operand.vmem [shape: f32[2,2,16], index: 5, kind: output, shape index: {2}]   ;;  %s1642_s6 = inlined_call_operand.vmem [shape: f32[2,2,16], index: 6, kind: output, shape index: {3}]  }
   0x1 LB: > { %s1180_s22 = sadd.s32 4294967295, %s1379_s21   ;;  %p1184_p0 = scmp.ge.s32.totalorder %s1379_s21, 1  ;;  %s1379_s21 = sphi %s1425_s21, %s17_s21  }
   0x2   : > { %p225_p1 = scmp.lt.s32.totalorder %s1379_s21, 3 }
   0x4   : > { %p226_p2 = pnand %p1184_p0, %p225_p1 }
   0x5   : > { %s1185_s23 = sshll.u32 (!%p226_p2), %s1180_s22, 2  ;;  %s270_s24 = ssub.s32 (!%p226_p2), 1, %s1180_s22 }
   0x6   : > { %229 = sbr.rel (%p226_p2) target bundleno = 2853 (0xb25), region = 32  ;;  %p266_p3 = scmp.lt.s32.totalorder (!%p226_p2), %s1185_s23, 7 }
   0x7   : > { %s1186_s25 = sshll.u32 (!%p226_p2), %s270_s24, 2  ;;  %p1191_p5 = scmp.ne.s32.totalorder (!%p226_p2), %s1180_s22, 0 }
   0x8   : > { %p272_p4 = scmp.lt.s32.totalorder (!%p226_p2), %s1186_s25, 7 }
   0xd   : > { %s1644_s23 = smov (!%p266_p3, %s1185_s23), 7  ;;  %s1646_s25 = smov (!%p272_p4, %s1186_s25), 7 }
   0xe   : > { %s1436_s28 = scalar_lea.vmem %s1636_s0, %s1644_s23  ;;  %s1188_s29 = sshll.u32 %s1644_s23, 1  ;;  %vm296_vm0 = vcmask (!%p1191_p5), 123904   ;;  %v1381_v0 = vmov (!%p1191_p5), 0.0  }
   0xf   : > { %s1441_s8 = scalar_lea.vmem %s1637_s1, %s1646_s25  ;;  %s1446_s11 = scalar_lea.vmem %s1639_s3, %s1188_s29  ;;  %297 = vst.msk [vmem:[#allocation2] sm:$0x3] (!%p1191_p5), %vm296_vm0, %v1381_v0  ;;  %298 = vst.msk [vmem:[#allocation2 + $0x2] sm:$0x3] (!%p1191_p5), %vm296_vm0, %v1381_v0 }
  0x10   : > { %s1190_s12 = sshll.u32 %s1646_s25, 1  ;;  %295 = sbr.rel (%p1191_p5) target bundleno = 23 (0x17), region = 36  ;;  %299 = vst.msk [vmem:[#allocation3] sm:$0x3] (!%p1191_p5), %vm296_vm0, %v1381_v0  ;;  %300 = vst.msk [vmem:[#allocation3 + $0x2] sm:$0x3] (!%p1191_p5), %vm296_vm0, %v1381_v0 }
  0x11   : > { %s1451_s15 = scalar_lea.vmem %s1640_s4, %s1190_s12 }
  0x17 PF: > { %v1456_v1 = vld [vmem:[%s1638_s2] sm:$0xff]   ;;  %v1382_v2 = vmov 0.0   ;;  %v1463_v3 = vld [vmem:[%s1638_s2 + $0x8] sm:$0xff]   ;;  %vm1383_vm1 = vmmov 0   ;;  %vm317_vm2 = vcmask 130048   ;;  %s1384_s20 = smov 16  }
  0x18   : > { %1242 = vmatprep.subr.bf16.mxu0 %v1382_v2  ;;  %1248 = vmatprep.subr.bf16.mxu1 %v1382_v2  ;;  %v305_v4 = vld [vmem:[#allocation2] sm:$0x3]  ;;  %v306_v5 = vld [vmem:[#allocation2 + $0x2] sm:$0x3]  ;;  %s1385_s22 = smov 96   ;;  %s1386_s23 = smov 32  }
  0x19   : > { %1243 = vmatpush3.bf16.msra.mxu0 %v1456_v1  ;;  %1244 = vmatprep.mubr.msk.bf16.mxu0 %vm1383_vm1, %v1382_v2  ;;  %v309_v6 = vpack.c.bf16 %v305_v4, %v305_v4  ;;  %v310_v7 = vpack.c.bf16 %v306_v5, %v306_v5  ;;  %v1199_v8 = vld.sshfl [vmem:[#allocation3] sm:$0x3 pattern:$0x76325410]  ;;  %v410_v10 = vld [vmem:[%s1436_s28] sm:$0x1] }
  0x1a   : > { %1249 = vmatpush3.bf16.msra.mxu1 %v1463_v3  ;;  %1250 = vmatprep.mubr.msk.bf16.mxu1 %vm1383_vm1, %v1382_v2  ;;  %v1200_v9 = vld.sshfl [vmem:[#allocation3 + $0x2] sm:$0x3 pattern:$0x76325410]  ;;  %v1196_v11 = vld [vmem:[%s1441_s8 + $0x3] sm:$0x1]  ;;  %v413_v12 = vunpack.c.l.bf16 %v410_v10 }
  0x1b   : > { %447 = vrot.lane.b32.xlu1 %v1199_v8, %s1384_s20  ;;  %1254 = vmatprep.subr.bf16.mxu0 %v1382_v2  ;;  %v414_v13 = vunpack.c.l.bf16 %v1196_v11  ;;  %s1387_s24 = smov 80   ;;  %v1204_v56 = vld [vmem:[%s1436_s28 + $0x1] sm:$0x1]  ;;  %v1205_v58 = vld [vmem:[%s1441_s8 + $0x2] sm:$0x1]  ;;  %vm498_vm3 = vcmask 123904  }
  0x1c   : > { %1245 = vmatmul.mubr.msk.bf16.vlgmr.msra.gmra.mrb[0].mxu0 %vm317_vm2, %v309_v6  ;;  %1260 = vmatprep.subr.bf16.mxu1 %v1382_v2  ;;  %v611_v57 = vunpack.c.l.bf16 %v1204_v56  ;;  %v612_v62 = vunpack.c.l.bf16 %v1205_v58  ;;  %s1389_s25 = smov 112  }
  0x1d   : > { %1251 = vmatmul.mubr.msk.bf16.vlgmr.msra.gmra.mrb[0].mxu1 %vm317_vm2, %v310_v7  ;;  %1255 = vmatpush3.bf16.msra.mxu0 %v1456_v1 }
  0x1e   : > { %1261 = vmatpush3.bf16.msra.mxu1 %v1463_v3  ;;  %1256 = vmatprep.mubr.msk.bf16.mxu0 %vm1383_vm1, %v1382_v2 }
  0x1f   : > { %449 = vrot.lane.b32.xlu1 %v1200_v9, %s1384_s20  ;;  %1262 = vmatprep.mubr.msk.bf16.mxu1 %vm1383_vm1, %v1382_v2 }
  0x20   : > { %1266 = vmatprep.subr.bf16.mxu0 %v1382_v2  ;;  %1272 = vmatprep.subr.bf16.mxu1 %v1382_v2 }
  0x8d   : > { %v448_v38 = vpop.permute.xlu1 %447 }
  0x91   : > { %v450_v40 = vpop.permute.xlu1 %449 }
  0xef   : > { %v355_v14 = vpop.f32.mrb[0].mxu0 }
  0xf0   : > { %v415_v15 = vadd.f32 %v413_v12, %v355_v14  ;;  %v1246_v16 = vpop.f32.mrb[1].mxu0  ;;  %v404_v17 = vpop.f32.mrb[0].mxu1 }
  0xf1   : > { %v416_v18 = vadd.f32 %v414_v13, %v404_v17  ;;  %v358_v19 = vpop.f32.mrb[2].mxu0  ;;  %v1252_v20 = vpop.f32.mrb[1].mxu1 }
  0xf2   : > { %1309 = vtanh.f32 %v415_v15  ;;  %v1247_v21 = vpop.f32.mrb[3].mxu0  ;;  %v407_v22 = vpop.f32.mrb[2].mxu1  ;;  %v1197_v26 = vmul.f32 -1.442695, %v415_v15 }
  0xf3   : > { %v1253_v23 = vpop.f32.mrb[3].mxu1  ;;  %1311 = vtanh.f32 %v416_v18  ;;  %v1198_v27 = vmul.f32 -1.442695, %v416_v18 }
  0xf4   : > { %1313 = vpow2.f32 %v1197_v26 }
  0xf5   : > { %1315 = vpow2.f32 %v1198_v27 }
  0xfc   : > { %v1310_v24 = vpop.eup %1309 }
  0xfd   : > { %457 = vrot.lane.b32.xlu0 %v1310_v24, %s1385_s22  ;;  %v1312_v25 = vpop.eup %1311 }
  0xfe   : > { %v1314_v28 = vpop.eup %1313 }
  0xff   : > { %v423_v29 = vadd.f32 1.0, %v1314_v28  ;;  %v1316_v30 = vpop.eup %1315 }
 0x100   : > { %v424_v31 = vadd.f32 1.0, %v1316_v30 }
 0x101   : > { %459 = vrot.lane.b32.xlu0 %v1312_v25, %s1385_s22  ;;  %1317 = vrcp.f32 %v423_v29 }
 0x102   : > { %1319 = vrcp.f32 %v424_v31 }
 0x10b   : > { %v1318_v32 = vpop.eup %1317 }
 0x10c   : > { %v1320_v35 = vpop.eup %1319  ;;  %v453_v39 = vmul.f32 %v1318_v32, %v448_v38 }
 0x10d   : > { %v454_v43 = vmul.f32 %v1320_v35, %v450_v40 }
 0x16f   : > { %v458_v33 = vpop.permute.xlu0 %457 }
 0x170   : > { %v463_v34 = vmul.f32 %v1318_v32, %v458_v33 }
 0x172   : > { %467 = vrot.lane.b32.xlu0 %v463_v34, %s1384_s20 }
 0x173   : > { %v460_v36 = vpop.permute.xlu0 %459 }
 0x174   : > { %v464_v37 = vmul.f32 %v1320_v35, %v460_v36 }
 0x176   : > { %469 = vrot.lane.b32.xlu1 %v464_v37, %s1384_s20 }
 0x1e4   : > { %v468_v41 = vpop.permute.xlu0 %467 }
 0x1e5   : > { %v1491_v42 = vadd.f32 %v468_v41, %v453_v39  ;;  %v1212_v39 = vld [vmem:[%s1436_s28 + $0x2] sm:$0x1]  ;;  %v1213_v41 = vld [vmem:[%s1441_s8 + $0x1] sm:$0x1] }
 0x1e6   : > { %v787_v40 = vunpack.c.l.bf16 %v1212_v39 }
 0x1e7   : > { %1321 = vtanh.f32 %v1491_v42 }
 0x1e8   : > { %v470_v44 = vpop.permute.xlu1 %469 }
 0x1e9   : > { %v1494_v45 = vadd.f32 %v470_v44, %v454_v43 }
 0x1eb   : > { %1323 = vtanh.f32 %v1494_v45 }
 0x1f1   : > { %v1322_v46 = vpop.eup %1321 }
 0x1f2   : > { %479 = vrot.lane.b32.xlu0 %v1322_v46, %s1386_s23 }
 0x1f5   : > { %v1324_v47 = vpop.eup %1323 }
 0x1f6   : > { %481 = vrot.lane.b32.xlu1 %v1324_v47, %s1386_s23 }
 0x264   : > { %v480_v48 = vpop.permute.xlu0 %479 }
 0x265   : > { %v1499_v49 = vmul.f32 %v1318_v32, %v480_v48 }
 0x267   : > { %v513_v50 = vpack.c.bf16 %v1499_v49, %v1499_v49 }
 0x268   : > { %v482_v51 = vpop.permute.xlu1 %481 }
 0x269   : > { %v1503_v52 = vmul.f32 %v1320_v35, %v482_v51  ;;  %516 = vrot.lane.b32.xlu0 %v513_v50, %s1387_s24 }
 0x26b   : > { %v514_v53 = vpack.c.bf16 %v1503_v52, %v1503_v52 }
 0x26d   : > { %562 = vrot.lane.b32.xlu1 %v514_v53, %s1387_s24 }
 0x2db   : > { %v517_v54 = vpop.permute.xlu0 %516 }
 0x2dc   : > { %1257 = vmatmul.mubr.msk.bf16.vlgmr.msra.gmra.mrb[4].mxu0 %vm317_vm2, %v517_v54 }
 0x2dd   : > { %1267 = vmatpush3.bf16.msra.mxu0 %v1456_v1  ;;  %1268 = vmatprep.mubr.msk.bf16.mxu0 %vm1383_vm1, %v1382_v2 }
 0x2de   : > { %1278 = vmatprep.subr.bf16.mxu0 %v1382_v2 }
 0x2df   : > { %v563_v55 = vpop.permute.xlu1 %562 }
 0x2e0   : > { %1263 = vmatmul.mubr.msk.bf16.vlgmr.msra.gmra.mrb[4].mxu1 %vm317_vm2, %v563_v55 }
 0x2e1   : > { %1273 = vmatpush3.bf16.msra.mxu1 %v1463_v3  ;;  %1274 = vmatprep.mubr.msk.bf16.mxu1 %vm1383_vm1, %v1382_v2 }
 0x2e2   : > { %1284 = vmatprep.subr.bf16.mxu1 %v1382_v2 }
 0x3af   : > { %v555_v59 = vpop.f32.mrb[4].mxu0 }
 0x3b0   : > { %v613_v60 = vadd.f32 %v611_v57, %v555_v59  ;;  %v1258_v61 = vpop.f32.mrb[5].mxu0 }
 0x3b1   : > { %v558_v63 = vpop.f32.mrb[6].mxu0 }
 0x3b2   : > { %1325 = vtanh.f32 %v613_v60  ;;  %v1259_v0 = vpop.f32.mrb[7].mxu0  ;;  %v1206_v11 = vmul.f32 -1.442695, %v613_v60 }
 0x3b3   : > { %v601_v4 = vpop.f32.mrb[4].mxu1 }
 0x3b4   : > { %v614_v5 = vadd.f32 %v612_v62, %v601_v4  ;;  %v1264_v6 = vpop.f32.mrb[5].mxu1 }
 0x3b5   : > { %v604_v7 = vpop.f32.mrb[6].mxu1 }
 0x3b6   : > { %1327 = vtanh.f32 %v614_v5  ;;  %v1265_v8 = vpop.f32.mrb[7].mxu1  ;;  %v1207_v12 = vmul.f32 -1.442695, %v614_v5 }
 0x3b7   : > { %1329 = vpow2.f32 %v1206_v11 }
 0x3b8   : > { %1331 = vpow2.f32 %v1207_v12 }
 0x3bc   : > { %v1326_v9 = vpop.eup %1325 }
 0x3bd   : > { %633 = vrot.lane.b32.xlu0 %v1326_v9, %s1385_s22 }
 0x3c0   : > { %v1328_v10 = vpop.eup %1327 }
 0x3c1   : > { %635 = vrot.lane.b32.xlu1 %v1328_v10, %s1385_s22  ;;  %v1330_v13 = vpop.eup %1329 }
 0x3c2   : > { %v621_v14 = vadd.f32 1.0, %v1330_v13  ;;  %v1332_v15 = vpop.eup %1331 }
 0x3c3   : > { %v622_v16 = vadd.f32 1.0, %v1332_v15 }
 0x3c4   : > { %1333 = vrcp.f32 %v621_v14 }
 0x3c5   : > { %1335 = vrcp.f32 %v622_v16 }
 0x3ce   : > { %v1334_v17 = vpop.eup %1333 }
 0x3cf   : > { %v1336_v20 = vpop.eup %1335  ;;  %v629_v23 = vmul.f32 %v1334_v17, %v1491_v42 }
 0x3d0   : > { %v630_v26 = vmul.f32 %v1336_v20, %v1494_v45  ;;  %v788_v45 = vunpack.c.l.bf16 %v1213_v41 }
 0x42f   : > { %v634_v18 = vpop.permute.xlu0 %633 }
 0x430   : > { %v639_v19 = vmul.f32 %v1334_v17, %v634_v18 }
 0x432   : > { %643 = vrot.lane.b32.xlu0 %v639_v19, %s1384_s20 }
 0x433   : > { %v636_v21 = vpop.permute.xlu1 %635 }
 0x434   : > { %v640_v22 = vmul.f32 %v1336_v20, %v636_v21  ;;  %v1220_v21 = vld [vmem:[%s1436_s28 + $0x3] sm:$0x1] }
 0x436   : > { %645 = vrot.lane.b32.xlu1 %v640_v22, %s1384_s20  ;;  %v962_v22 = vunpack.c.l.bf16 %v1220_v21 }
 0x4a4   : > { %v644_v24 = vpop.permute.xlu0 %643 }
 0x4a5   : > { %v1526_v25 = vadd.f32 %v644_v24, %v629_v23  ;;  %v961_v23 = vld [vmem:[%s1441_s8] sm:$0x1] }
 0x4a7   : > { %1337 = vtanh.f32 %v1526_v25 }
 0x4a8   : > { %v646_v27 = vpop.permute.xlu1 %645 }
 0x4a9   : > { %v1530_v28 = vadd.f32 %v646_v27, %v630_v26  ;;  %v963_v27 = vunpack.c.l.bf16 %v961_v23 }
 0x4ab   : > { %1339 = vtanh.f32 %v1530_v28 }
 0x4b1   : > { %v1338_v29 = vpop.eup %1337 }
 0x4b2   : > { %655 = vrot.lane.b32.xlu0 %v1338_v29, %s1386_s23 }
 0x4b5   : > { %v1340_v30 = vpop.eup %1339 }
 0x4b6   : > { %657 = vrot.lane.b32.xlu1 %v1340_v30, %s1386_s23 }
 0x524   : > { %v656_v31 = vpop.permute.xlu0 %655 }
 0x525   : > { %v1535_v32 = vmul.f32 %v1334_v17, %v656_v31 }
 0x527   : > { %v689_v33 = vpack.c.bf16 %v1535_v32, %v1535_v32 }
 0x528   : > { %v658_v34 = vpop.permute.xlu1 %657 }
 0x529   : > { %v1539_v35 = vmul.f32 %v1336_v20, %v658_v34  ;;  %692 = vrot.lane.b32.xlu0 %v689_v33, %s1387_s24 }
 0x52b   : > { %v690_v36 = vpack.c.bf16 %v1539_v35, %v1539_v35 }
 0x52d   : > { %738 = vrot.lane.b32.xlu1 %v690_v36, %s1387_s24 }
 0x59b   : > { %v693_v37 = vpop.permute.xlu0 %692 }
 0x59c   : > { %1269 = vmatmul.mubr.msk.bf16.vlgmr.msra.gmra.mrb[8].mxu0 %vm317_vm2, %v693_v37 }
 0x59d   : > { %1279 = vmatpush3.bf16.msra.mxu0 %v1456_v1  ;;  %1280 = vmatprep.mubr.msk.bf16.mxu0 %vm1383_vm1, %v1382_v2 }
 0x59f   : > { %v739_v38 = vpop.permute.xlu1 %738 }
 0x5a0   : > { %1275 = vmatmul.mubr.msk.bf16.vlgmr.msra.gmra.mrb[8].mxu1 %vm317_vm2, %v739_v38 }
 0x5a1   : > { %1285 = vmatpush3.bf16.msra.mxu1 %v1463_v3  ;;  %1286 = vmatprep.mubr.msk.bf16.mxu1 %vm1383_vm1, %v1382_v2 }
 0x66f   : > { %v731_v42 = vpop.f32.mrb[8].mxu0 }
 0x670   : > { %v789_v43 = vadd.f32 %v787_v40, %v731_v42  ;;  %v1270_v44 = vpop.f32.mrb[9].mxu0 }
 0x671   : > { %v734_v46 = vpop.f32.mrb[10].mxu0 }
 0x672   : > { %1341 = vtanh.f32 %v789_v43  ;;  %v1271_v1 = vpop.f32.mrb[11].mxu0  ;;  %v1214_v54 = vmul.f32 -1.442695, %v789_v43 }
 0x673   : > { %v777_v47 = vpop.f32.mrb[8].mxu1 }
 0x674   : > { %v790_v48 = vadd.f32 %v788_v45, %v777_v47  ;;  %v1276_v50 = vpop.f32.mrb[9].mxu1 }
 0x675   : > { %v780_v51 = vpop.f32.mrb[10].mxu1 }
 0x676   : > { %1343 = vtanh.f32 %v790_v48  ;;  %v1277_v53 = vpop.f32.mrb[11].mxu1  ;;  %v1215_v55 = vmul.f32 -1.442695, %v790_v48 }
 0x677   : > { %1345 = vpow2.f32 %v1214_v54  ;;  %v1388_v54 = vmov 1983009808  }
 0x678   : > { %1347 = vpow2.f32 %v1215_v55  ;;  %v489_v55 = vunpack.c.l.s4 %v1388_v54 }
 0x67c   : > { %v1342_v3 = vpop.eup %1341 }
 0x67d   : > { %809 = vrot.lane.b32.xlu0 %v1342_v3, %s1385_s22 }
 0x680   : > { %v1344_v2 = vpop.eup %1343 }
 0x681   : > { %811 = vrot.lane.b32.xlu1 %v1344_v2, %s1385_s22  ;;  %v1346_v56 = vpop.eup %1345 }
 0x682   : > { %v797_v57 = vadd.f32 1.0, %v1346_v56  ;;  %v1348_v58 = vpop.eup %1347  ;;  %v491_v56 = vlaneseq }
 0x683   : > { %v798_v59 = vadd.f32 1.0, %v1348_v58 }
 0x684   : > { %1349 = vrcp.f32 %v797_v57 }
 0x685   : > { %1351 = vrcp.f32 %v798_v59  ;;  %v490_v59 = vunpack.c.0.s8 %v489_v55 }
 0x68e   : > { %v1350_v60 = vpop.eup %1349 }
 0x68f   : > { %v1352_v63 = vpop.eup %1351  ;;  %v805_v5 = vmul.f32 %v1350_v60, %v1526_v25 }
 0x690   : > { %v806_v8 = vmul.f32 %v1352_v63, %v1530_v28 }
 0x6ef   : > { %v810_v61 = vpop.permute.xlu0 %809 }
 0x6f0   : > { %v815_v62 = vmul.f32 %v1350_v60, %v810_v61 }
 0x6f2   : > { %819 = vrot.lane.b32.xlu0 %v815_v62, %s1384_s20 }
 0x6f3   : > { %v812_v0 = vpop.permute.xlu1 %811 }
 0x6f4   : > { %v816_v4 = vmul.f32 %v1352_v63, %v812_v0 }
 0x6f6   : > { %821 = vrot.lane.b32.xlu1 %v816_v4, %s1384_s20 }
 0x764   : > { %v820_v6 = vpop.permute.xlu0 %819 }
 0x765   : > { %v825_v7 = vadd.f32 %v820_v6, %v805_v5 }
 0x767   : > { %1353 = vtanh.f32 %v825_v7 }
 0x768   : > { %v822_v9 = vpop.permute.xlu1 %821 }
 0x769   : > { %v826_v10 = vadd.f32 %v822_v9, %v806_v8 }
 0x76b   : > { %1355 = vtanh.f32 %v826_v10 }
 0x771   : > { %v1354_v11 = vpop.eup %1353 }
 0x772   : > { %831 = vrot.lane.b32.xlu0 %v1354_v11, %s1386_s23 }
 0x775   : > { %v1356_v12 = vpop.eup %1355 }
 0x776   : > { %833 = vrot.lane.b32.xlu1 %v1356_v12, %s1386_s23 }
 0x7e4   : > { %v832_v13 = vpop.permute.xlu0 %831 }
 0x7e5   : > { %v1563_v14 = vmul.f32 %v1350_v60, %v832_v13  ;;  %v492_v60 = vshrl.u32 %v491_v56, 7 }
 0x7e7   : > { %v865_v15 = vpack.c.bf16 %v1563_v14, %v1563_v14  ;;  %v493_v61 = vsub.s32 %v490_v59, %v492_v60 }
 0x7e8   : > { %v834_v16 = vpop.permute.xlu1 %833 }
 0x7e9   : > { %v1567_v17 = vmul.f32 %v1352_v63, %v834_v16  ;;  %868 = vrot.lane.b32.xlu0 %v865_v15, %s1387_s24  ;;  %v494_v63 = vrot.slane %v1499_v49, %v493_v61  ;;  %v507_v4 = vrot.slane %v1503_v52, %v493_v61  ;;  %v670_v5 = vrot.slane %v1535_v32, %v493_v61 }
 0x7ea   : > { %v683_v6 = vrot.slane %v1539_v35, %v493_v61 }
 0x7eb   : > { %v866_v18 = vpack.c.bf16 %v1567_v17, %v1567_v17  ;;  %v859_v49 = vrot.slane %v1567_v17, %v493_v61 }
 0x7ed   : > { %914 = vrot.lane.b32.xlu1 %v866_v18, %s1387_s24 }
 0x85b   : > { %v869_v19 = vpop.permute.xlu0 %868 }
 0x85c   : > { %1281 = vmatmul.mubr.msk.bf16.vlgmr.msra.gmra.mrb[12].mxu0 %vm317_vm2, %v869_v19 }
 0x85f   : > { %v915_v20 = vpop.permute.xlu1 %914 }
 0x860   : > { %1287 = vmatmul.mubr.msk.bf16.vlgmr.msra.gmra.mrb[12].mxu1 %vm317_vm2, %v915_v20 }
 0x92f   : > { %v907_v24 = vpop.f32.mrb[12].mxu0 }
 0x930   : > { %v964_v25 = vadd.f32 %v962_v22, %v907_v24  ;;  %v1282_v26 = vpop.f32.mrb[13].mxu0 }
 0x931   : > { %v910_v28 = vpop.f32.mrb[14].mxu0 }
 0x932   : > { %1357 = vtanh.f32 %v964_v25  ;;  %v1283_v29 = vpop.f32.mrb[15].mxu0  ;;  %v1221_v39 = vmul.f32 -1.442695, %v964_v25 }
 0x933   : > { %v953_v30 = vpop.f32.mrb[12].mxu1 }
 0x934   : > { %v965_v31 = vadd.f32 %v963_v27, %v953_v30  ;;  %v1288_v33 = vpop.f32.mrb[13].mxu1 }
 0x935   : > { %v956_v34 = vpop.f32.mrb[14].mxu1 }
 0x936   : > { %1359 = vtanh.f32 %v965_v31  ;;  %v1289_v36 = vpop.f32.mrb[15].mxu1  ;;  %v1222_v40 = vmul.f32 -1.442695, %v965_v31 }
 0x937   : > { %1361 = vpow2.f32 %v1221_v39 }
 0x938   : > { %1363 = vpow2.f32 %v1222_v40 }
 0x93c   : > { %v1358_v37 = vpop.eup %1357 }
 0x93d   : > { %984 = vrot.lane.b32.xlu0 %v1358_v37, %s1385_s22 }
 0x940   : > { %v1360_v38 = vpop.eup %1359 }
 0x941   : > { %986 = vrot.lane.b32.xlu1 %v1360_v38, %s1385_s22  ;;  %v1362_v41 = vpop.eup %1361 }
 0x942   : > { %v972_v42 = vadd.f32 1.0, %v1362_v41  ;;  %v1364_v43 = vpop.eup %1363 }
 0x943   : > { %v973_v44 = vadd.f32 1.0, %v1364_v43 }
 0x944   : > { %1365 = vrcp.f32 %v972_v42 }
 0x945   : > { %1367 = vrcp.f32 %v973_v44 }
 0x94e   : > { %v1366_v45 = vpop.eup %1365 }
 0x94f   : > { %v1368_v47 = vpop.eup %1367  ;;  %v980_v51 = vmul.f32 %v1366_v45, %v825_v7  ;;  %v846_v7 = vrot.slane %v1563_v14, %v493_v61 }
 0x950   : > { %v981_v2 = vmul.f32 %v1368_v47, %v826_v10 }
 0x9af   : > { %v985_v46 = vpop.permute.xlu0 %984 }
 0x9b0   : > { %v990_v1 = vmul.f32 %v1366_v45, %v985_v46 }
 0x9b2   : > { %994 = vrot.lane.b32.xlu0 %v990_v1, %s1384_s20 }
 0x9b3   : > { %v987_v48 = vpop.permute.xlu1 %986 }
 0x9b4   : > { %v991_v50 = vmul.f32 %v1368_v47, %v987_v48 }
 0x9b6   : > { %996 = vrot.lane.b32.xlu1 %v991_v50, %s1384_s20 }
 0xa24   : > { %v995_v53 = vpop.permute.xlu0 %994 }
 0xa25   : > { %v1000_v3 = vadd.f32 %v995_v53, %v980_v51 }
 0xa27   : > { %1369 = vtanh.f32 %v1000_v3  ;;  %v1049_v11 = vrot.slane %v1000_v3, %v493_v61 }
 0xa28   : > { %v997_v57 = vpop.permute.xlu1 %996 }
 0xa29   : > { %v1001_v58 = vadd.f32 %v997_v57, %v981_v2 }
 0xa2b   : > { %1371 = vtanh.f32 %v1001_v58  ;;  %v1056_v15 = vrot.slane %v1001_v58, %v493_v61 }
 0xa31   : > { %v1370_v62 = vpop.eup %1369 }
 0xa32   : > { %1006 = vrot.lane.b32.xlu0 %v1370_v62, %s1386_s23 }
 0xa35   : > { %v1372_v0 = vpop.eup %1371 }
 0xa36   : > { %1008 = vrot.lane.b32.xlu1 %v1372_v0, %s1386_s23  ;;  %495 = vrot.lane.b32.xlu0 %v494_v63, %s1387_s24 }
 0xa3a   : > { %508 = vrot.lane.b32.xlu1 %v507_v4, %s1387_s24  ;;  %671 = vrot.lane.b32.xlu0 %v670_v5, %s1387_s24 }
 0xa3e   : > { %684 = vrot.lane.b32.xlu1 %v683_v6, %s1387_s24  ;;  %847 = vrot.lane.b32.xlu0 %v846_v7, %s1387_s24 }
 0xa42   : > { %860 = vrot.lane.b32.xlu1 %v859_v49, %s1387_s24 }
 0xaa4   : > { %v1007_v52 = vpop.permute.xlu0 %1006 }
 0xaa5   : > { %v1012_v32 = vmul.f32 %v1366_v45, %v1007_v52 }
 0xaa7   : > { %v1021_v8 = vrot.slane %v1012_v32, %v493_v61 }
 0xaa8   : > { %v1009_v9 = vpop.permute.xlu1 %1008  ;;  %v496_v10 = vpop.permute.xlu0 %495 }
 0xaa9   : > { %v1013_v35 = vmul.f32 %v1368_v47, %v1009_v9  ;;  %499 = vst.msk [vmem:[%s1446_s11] sm:$0x3] %vm498_vm3, %v496_v10  ;;  %1022 = vrot.lane.b32.xlu0 %v1021_v8, %s1387_s24 }
 0xaab   : > { %v1034_v12 = vrot.slane %v1013_v35, %v493_v61 }
 0xaac   : > { %v509_v13 = vpop.permute.xlu1 %508  ;;  %v672_v14 = vpop.permute.xlu0 %671 }
 0xaad   : > { %1201 = vst.msk [vmem:[%s1451_s15 + $0x6] sm:$0x3] %vm498_vm3, %v509_v13  ;;  %1208 = vst.msk [vmem:[%s1446_s11 + $0x2] sm:$0x3] %vm498_vm3, %v672_v14  ;;  %1035 = vrot.lane.b32.xlu1 %v1034_v12, %s1387_s24  ;;  %1057 = vrot.lane.b32.xlu0 %v1049_v11, %s1389_s25 }
 0xab0   : > { %v685_v16 = vpop.permute.xlu1 %684  ;;  %v848_v17 = vpop.permute.xlu0 %847 }
 0xab1   : > { %1209 = vst.msk [vmem:[%s1451_s15 + $0x4] sm:$0x3] %vm498_vm3, %v685_v16  ;;  %1216 = vst.msk [vmem:[%s1446_s11 + $0x4] sm:$0x3] %vm498_vm3, %v848_v17  ;;  %1059 = vrot.lane.b32.xlu1 %v1056_v15, %s1389_s25 }
 0xab4   : > { %v861_v18 = vpop.permute.xlu1 %860 }
 0xab5   : > { %1217 = vst.msk [vmem:[%s1451_s15 + $0x2] sm:$0x3] %vm498_vm3, %v861_v18 }
 0xb1b   : > { %v1023_v19 = vpop.permute.xlu0 %1022 }
 0xb1c   : > { %1223 = vst.msk [vmem:[%s1446_s11 + $0x6] sm:$0x3] %vm498_vm3, %v1023_v19  ;;  %1039 = vst.msk [vmem:[#allocation2] sm:$0x3] %vm498_vm3, %v1023_v19 }
 0xb1d   : > { %1065 = vst.msk [vmem:[%s1641_s5] sm:$0x3] %vm498_vm3, %v1023_v19 }
 0xb1f   : > { %v1036_v20 = vpop.permute.xlu1 %1035  ;;  %v1058_v21 = vpop.permute.xlu0 %1057 }
 0xb20   : > { %1038 = vst.msk [vmem:[%s1451_s15] sm:$0x3] %vm498_vm3, %v1036_v20  ;;  %1040 = vst.msk [vmem:[#allocation2 + $0x2] sm:$0x3] %vm498_vm3, %v1036_v20 }
 0xb21   : > { %1066 = vst.msk [vmem:[%s1641_s5 + $0x2] sm:$0x3] %vm498_vm3, %v1036_v20  ;;  %1063 = vst.msk [vmem:[#allocation3] sm:$0x3] %vm498_vm3, %v1058_v21 }
 0xb22   : > { %1067 = vst.msk [vmem:[%s1642_s6] sm:$0x3] %vm498_vm3, %v1058_v21 }
 0xb23   : > { %v1060_v22 = vpop.permute.xlu1 %1059 }
 0xb24   : > { %1064 = vst.msk [vmem:[#allocation3 + $0x2] sm:$0x3] %vm498_vm3, %v1060_v22  ;;  %1068 = vst.msk [vmem:[%s1642_s6 + $0x2] sm:$0x3] %vm498_vm3, %v1060_v22 }
 0xb25 PF: > { %s17_s21 = sadd.s32 1, %s1379_s21  }
 0xb26   : > { %p14_p6 = scmp.ge.s32.totalorder %s17_s21, 4  }
 0xb28   :  { %16 = sbr.rel (!%p14_p6) target bundleno = 1 (0x1), region = 109 }

</bundles_post_ra>
